<compile_context>
chip_gen: v7x
topology: tpu7x:2x2x1
jax: 0.10.0
libtpu: 0.0.40
codegen_flags: <defaults>
</compile_context>

<pallas_src>
import math

import jax
import jax.numpy as jnp
from jax import lax
from jax.experimental import pallas as pl
from jax.experimental.pallas import tpu as pltpu


# Original (in, out) dims of linear1..linear8.
_LAYER_DIMS = [(3, 16), (16, 64), (64, 256), (256, 256),
               (256, 256), (256, 64), (64, 16), (16, 3)]

# Dims as stored in the packed weight slab:
#   layer 1 : input padded 3 -> 8 (tiny MXU matmul instead of lane broadcasts)
#   layer 8 : stored TRANSPOSED ([out_pad=8, in=16]) for the lane-dense
#             transposed output matmul.
_PADDED_DIMS = [(8, 16), (16, 64), (64, 256), (256, 256),
                (256, 256), (256, 64), (64, 16), (8, 16)]

_IN_PAD = 8            # x feature padding (3 -> 8)
_OUT_ROWS = 8          # transposed-output sublane padding (3 -> 8)
_W_LANES = 256         # lane width of the packed weight / bias slabs
_MAX_BATCH_TILE = 1024 # per perf review (VMEM working set stays ~a few MB)


def _round_up(n, m):
    return ((n + m - 1) // m) * m


def _cdiv(a, b):
    return -(-a // b)


def _slab_offsets():
    # 16-row alignment so every weight slice starts on a bf16 packing boundary.
    offs, off = [], 0
    for (r, _c) in _PADDED_DIMS:
        offs.append(off)
        off += _round_up(r, 16)
    return offs, off


_W_OFFS, _W_ROWS = _slab_offsets()   # offsets: 0,16,32,96,352,608,864,928 ; total 944


def _supports_bf16_vpu():
    """bf16 elementwise is a win on v6e/v7x; v5e-and-older have no bf16 VPU."""
    try:
        kind = jax.devices()[0].device_kind.lower()
    except Exception:
        return True
    return not any(s in kind for s in ("v2", "v3", "v4", "v5"))


# ----------------------------- Pallas kernel -------------------------------


def _make_kernel(batch_tile, split, bf16_ew):
    dims, offs = _PADDED_DIMS, _W_OFFS
    ew_dtype = jnp.bfloat16 if bf16_ew else jnp.float32

    def kernel(x_ref, w_ref, b_ref, b8t_ref, o_ref):
        # Ref *views* into the packed slabs (no load until point of use, so the
        # compiler can stream weight loads straight into each matmul).
        wv = [w_ref.at[offs[i]:offs[i] + r, 0:c] for i, (r, c) in enumerate(dims)]
        bv = [b_ref.at[i:i + 1, 0:dims[i][1]] for i in range(7)]

        def chain(xh):                                     # xh: [rows, 8] f32
            h = xh.astype(jnp.bfloat16)
            for i in range(7):                             # linear1..linear7 + ReLU
                y = jnp.dot(h, wv[i][...], preferred_element_type=jnp.float32)
                if bf16_ew:
                    y = y.astype(jnp.bfloat16)             # bf16 bias+ReLU (v6e/v7x)
                b = bv[i][...].astype(ew_dtype)
                h = jnp.maximum(y + b, 0).astype(jnp.bfloat16)
            # Dropout(p=0.1) in eval mode is the identity.
            # TODO(synk): training-mode stochastic dropout (pltpu.prng_*) not implemented.
            # linear8 computed transposed: out_T[8, rows] = W8^T @ h^T, so the
            # batch dim lands on lanes and the padded writeback is only 8 rows.
            yT = lax.dot_general(
                wv[7][...], h,
                dimension_numbers=(((1,), (1,)), ((), ())),
                preferred_element_type=jnp.float32)        # [8, rows]
            return jnp.tanh(yT + b8t_ref[...])             # [8,1] bias broadcast

        if split:
            # Two independent half-tile chains -> MXU / VPU / EUP overlap.
            half = batch_tile // 2
            o_ref[...] = jnp.concatenate(
                [chain(x_ref[0:half, :]), chain(x_ref[half:batch_tile, :])],
                axis=-1).astype(o_ref.dtype)
        else:
            o_ref[...] = chain(x_ref[...]).astype(o_ref.dtype)

    return kernel


# ------------------------------ wrapper ------------------------------------


def mlp_forward(x, params, *, max_batch_tile=_MAX_BATCH_TILE, bf16_elementwise=None):
    """x: [B, 3] float32.  params: list of 8 (W [in,out], b [1,out]) f32 pairs."""
    B, F = x.shape
    assert F == 3 and len(params) == 8
    if bf16_elementwise is None:
        bf16_elementwise = _supports_bf16_vpu()

    # ---- batch tiling --------------------------------------------------------
    # B < 128 : one grid step (latency-bound; splitting just adds overhead).
    # B >= 128: an even number of "parallel" steps so both v7x TCs get work;
    #           tiles are multiples of 128 (lane-dense transposed output).
    if B < 128:
        n_steps = 1
        batch_tile = _round_up(B, 8)
    else:
        n_steps = 2 * max(1, _cdiv(B, 2 * max_batch_tile))
        batch_tile = _round_up(_cdiv(B, n_steps), 128)
    b_pad = n_steps * batch_tile
    split = batch_tile >= 256       # two in-kernel half chains only for big tiles

    # Pad batch to the tiled extent and features 3 -> 8 (zero K-padding).
    x_p = jnp.pad(x.astype(jnp.float32), ((0, b_pad - B), (0, _IN_PAD - F)))

    # ---- pack parameters into slabs ------------------------------------------
    # One bf16 slab for all 8 weight matrices (layer 8 stored transposed), one
    # f32 slab for biases 1..7, plus the tiny transposed final bias.  Zero
    # padding is harmless everywhere (padded input cols / padded output rows
    # produce tanh(0)=0 rows which the wrapper discards).
    w_slab = jnp.zeros((_W_ROWS, _W_LANES), jnp.bfloat16)
    b_slab = jnp.zeros((8, _W_LANES), jnp.float32)
    for i, (w, b) in enumerate(params):
        w = w.astype(jnp.bfloat16)
        if i == 7:
            w = w.T                                       # [3,16] stored transposed
        r, c = w.shape
        w_slab = w_slab.at[_W_OFFS[i]:_W_OFFS[i] + r, :c].set(w)
        if i < 7:
            b_slab = b_slab.at[i, :b.shape[-1]].set(
                b.reshape(-1).astype(jnp.float32))
    b8t = jnp.zeros((_OUT_ROWS, 1), jnp.float32).at[:3, 0].set(
        params[7][1].reshape(-1).astype(jnp.float32))

    def whole(arr):
        # Constant block index -> DMA'd once, resident across grid steps.
        return pl.BlockSpec(arr.shape, lambda i: (0, 0))

    in_specs = [
        pl.BlockSpec((batch_tile, _IN_PAD), lambda i: (i, 0)),
        whole(w_slab), whole(b_slab), whole(b8t),
    ]
    out_specs = pl.BlockSpec((_OUT_ROWS, batch_tile), lambda i: (0, i))

    flops = 2 * b_pad * sum(fi * fo for fi, fo in _LAYER_DIMS)
    weight_bytes = (w_slab.size * w_slab.dtype.itemsize
                    + b_slab.size * 4 + b8t.size * 4)
    cost = pl.CostEstimate(
        flops=flops,
        transcendentals=b_pad * _OUT_ROWS,                # padded tanh rows computed
        bytes_accessed=(b_pad * _IN_PAD * 4               # x read
                        + _OUT_ROWS * b_pad * 4           # transposed output write
                        + weight_bytes),
    )

    out = pl.pallas_call(
        _make_kernel(batch_tile, split, bf16_elementwise),
        out_shape=jax.ShapeDtypeStruct((_OUT_ROWS, b_pad), jnp.float32),
        grid_spec=pltpu.PrefetchScalarGridSpec(
            num_scalar_prefetch=0,
            grid=(n_steps,),
            in_specs=in_specs,
            out_specs=out_specs,
        ),
        compiler_params=pltpu.CompilerParams(
            dimension_semantics=("parallel",),
            vmem_limit_bytes=32 * 1024 * 1024,   # explicit (v5e default is only 16 MiB)
        ),
        cost_estimate=cost,
    )(x_p, w_slab, b_slab, b8t)

    # Transposed, padded output -> [B, 3].
    return out[:3, :B].T


# ------------------------- parameter initialization ------------------------


def _xavier_uniform(key, fan_in, fan_out):
    # torch.nn.init.xavier_uniform_ : U(-a, a), a = sqrt(6 / (fan_in + fan_out)).
    # Stored pre-transposed as [in, out] (symmetric in fan_in/fan_out).
    a = math.sqrt(6.0 / (fan_in + fan_out))
    return jax.random.uniform(key, (fan_in, fan_out), jnp.float32, -a, a)


def _default_bias(key, fan_in, fan_out):
    # torch default Linear bias init: U(-1/sqrt(fan_in), 1/sqrt(fan_in)).
    bound = 1.0 / math.sqrt(fan_in)
    return jax.random.uniform(key, (1, fan_out), jnp.float32, -bound, bound)


def init_params(key):
    params = []
    for (fi, fo) in _LAYER_DIMS:
        key, kw, kb = jax.random.split(key, 3)
        params.append((_xavier_uniform(kw, fi, fo), _default_bias(kb, fi, fo)))
    return params


# ------------------------------ references ---------------------------------


def _reference_bf16(x, params, bf16_ew):
    """Pure-JAX reference mirroring the kernel's dtype choices."""
    h = x.astype(jnp.bfloat16)
    for i in range(7):
        w, b = params[i]
        y = jnp.dot(h, w.astype(jnp.bfloat16), preferred_element_type=jnp.float32)
        if bf16_ew:
            y = y.astype(jnp.bfloat16)
            b = b.astype(jnp.bfloat16)
        h = jnp.maximum(y + b, 0).astype(jnp.bfloat16)
    w8, b8 = params[7]
    y = jnp.dot(h, w8.astype(jnp.bfloat16),
                preferred_element_type=jnp.float32) + b8
    return jnp.tanh(y)


def _reference_f32(x, params):
    h = x.astype(jnp.float32)
    for i, (w, b) in enumerate(params):
        y = h @ w + b
        h = jnp.maximum(y, 0.0) if i < 7 else jnp.tanh(y)
    return h


# --------------------------------- main -------------------------------------


if __name__ == "__main__":
    key = jax.random.PRNGKey(0)
    key, kx, kx2 = jax.random.split(key, 3)
    params = init_params(key)
    bf16_ew = _supports_bf16_vpu()

    # Small deterministic example (single grid step, single chain).
    B = 16
    x = jax.random.normal(kx, (B, 3), dtype=jnp.float32)
    out = jax.block_until_ready(mlp_forward(x, params, bf16_elementwise=bf16_ew))
    assert out.shape == (B, 3), out.shape
    assert out.dtype == jnp.float32

    ref_bf16 = _reference_bf16(x, params, bf16_ew)
    assert jnp.allclose(out, ref_bf16, atol=5e-3, rtol=5e-3), \
        float(jnp.max(jnp.abs(out - ref_bf16)))
    ref_f32 = _reference_f32(x, params)
    assert jnp.allclose(out, ref_f32, atol=1e-1, rtol=1e-1)

    # Larger ragged batch: exercises padding, the even multi-step "parallel"
    # grid (both v7x TCs) and the split half-tile chains.
    B2 = 300
    x2 = jax.random.normal(kx2, (B2, 3), dtype=jnp.float32)
    out2 = jax.block_until_ready(mlp_forward(x2, params, bf16_elementwise=bf16_ew))
    assert out2.shape == (B2, 3), out2.shape
    ref2 = _reference_bf16(x2, params, bf16_ew)
    assert jnp.allclose(out2, ref2, atol=5e-3, rtol=5e-3), \
        float(jnp.max(jnp.abs(out2 - ref2)))

    print("KERNEL_OK")
</pallas_src>

<mosaic_0001>
module attributes {stable_mosaic.version = 11 : i64} {
  func.func @kernel(%arg0: i32, %arg1: memref<16x8xf32, #tpu.memory_space<vmem>>, %arg2: memref<944x256xbf16, #tpu.memory_space<vmem>>, %arg3: memref<8x256xf32, #tpu.memory_space<vmem>>, %arg4: memref<8x1xf32, #tpu.memory_space<vmem>>, %arg5: memref<8x16xf32, #tpu.memory_space<vmem>>) attributes {dimension_semantics = [#tpu.dimension_semantics<parallel>], iteration_bounds = array<i64: 1>, scalar_prefetch = 0 : i64, scratch_operands = 0 : i64, tpu.core_type = #tpu.core_type<tc>, window_params = [{transform_indices = @transform_0, window_bounds = array<i64: 16, 8>}, {pipeline_mode = #tpu.pipeline_mode<synchronous>, transform_indices = @transform_1, window_bounds = array<i64: 944, 256>}, {pipeline_mode = #tpu.pipeline_mode<synchronous>, transform_indices = @transform_2, window_bounds = array<i64: 8, 256>}, {pipeline_mode = #tpu.pipeline_mode<synchronous>, transform_indices = @transform_3, window_bounds = array<i64: 8, 1>}, {transform_indices = @transform_4, window_bounds = array<i64: 8, 16>}]} {
    %c0 = arith.constant 0 : index
    %c0_0 = arith.constant 0 : index
    %0 = vector.load %arg1[%c0, %c0_0] : memref<16x8xf32, #tpu.memory_space<vmem>>, vector<16x8xf32>
    %1 = arith.truncf %0 : vector<16x8xf32> to vector<16x8xbf16>
    %c0_1 = arith.constant 0 : index
    %c0_2 = arith.constant 0 : index
    %2 = vector.load %arg2[%c0_1, %c0_2] : memref<944x256xbf16, #tpu.memory_space<vmem>>, vector<8x16xbf16>
    %cst = arith.constant dense<0.000000e+00> : vector<16x16xf32>
    %3 = tpu.matmul %1, %2, %cst {dimension_numbers = #tpu.dot_dimension_numbers<[1], [0], [0], [1], [0, 0, 1, 1], [], []>} : vector<16x8xbf16>, vector<8x16xbf16>, vector<16x16xf32> -> vector<16x16xf32>
    %4 = arith.truncf %3 : vector<16x16xf32> to vector<16x16xbf16>
    %c0_3 = arith.constant 0 : index
    %c0_4 = arith.constant 0 : index
    %5 = vector.load %arg3[%c0_3, %c0_4] : memref<8x256xf32, #tpu.memory_space<vmem>>, vector<1x16xf32>
    %6 = arith.truncf %5 : vector<1x16xf32> to vector<1x16xbf16>
    %7 = vector.broadcast %6 : vector<1x16xbf16> to vector<16x16xbf16>
    %8 = arith.addf %4, %7 : vector<16x16xbf16>
    %cst_5 = arith.constant 0.000000e+00 : bf16
    %9 = vector.broadcast %cst_5 : bf16 to vector<16x16xbf16>
    %10 = arith.maximumf %8, %9 : vector<16x16xbf16>
    %c16 = arith.constant 16 : index
    %c0_6 = arith.constant 0 : index
    %11 = vector.load %arg2[%c16, %c0_6] : memref<944x256xbf16, #tpu.memory_space<vmem>>, vector<16x64xbf16>
    %cst_7 = arith.constant dense<0.000000e+00> : vector<16x64xf32>
    %12 = tpu.matmul %10, %11, %cst_7 {dimension_numbers = #tpu.dot_dimension_numbers<[1], [0], [0], [1], [0, 0, 1, 1], [], []>} : vector<16x16xbf16>, vector<16x64xbf16>, vector<16x64xf32> -> vector<16x64xf32>
    %13 = arith.truncf %12 : vector<16x64xf32> to vector<16x64xbf16>
    %c1 = arith.constant 1 : index
    %c0_8 = arith.constant 0 : index
    %14 = vector.load %arg3[%c1, %c0_8] : memref<8x256xf32, #tpu.memory_space<vmem>>, vector<1x64xf32>
    %15 = arith.truncf %14 : vector<1x64xf32> to vector<1x64xbf16>
    %16 = vector.broadcast %15 : vector<1x64xbf16> to vector<16x64xbf16>
    %17 = arith.addf %13, %16 : vector<16x64xbf16>
    %cst_9 = arith.constant 0.000000e+00 : bf16
    %18 = vector.broadcast %cst_9 : bf16 to vector<16x64xbf16>
    %19 = arith.maximumf %17, %18 : vector<16x64xbf16>
    %c32 = arith.constant 32 : index
    %c0_10 = arith.constant 0 : index
    %20 = vector.load %arg2[%c32, %c0_10] : memref<944x256xbf16, #tpu.memory_space<vmem>>, vector<64x256xbf16>
    %cst_11 = arith.constant dense<0.000000e+00> : vector<16x256xf32>
    %21 = tpu.matmul %19, %20, %cst_11 {dimension_numbers = #tpu.dot_dimension_numbers<[1], [0], [0], [1], [0, 0, 1, 1], [], []>} : vector<16x64xbf16>, vector<64x256xbf16>, vector<16x256xf32> -> vector<16x256xf32>
    %22 = arith.truncf %21 : vector<16x256xf32> to vector<16x256xbf16>
    %c2 = arith.constant 2 : index
    %c0_12 = arith.constant 0 : index
    %23 = vector.load %arg3[%c2, %c0_12] : memref<8x256xf32, #tpu.memory_space<vmem>>, vector<1x256xf32>
    %24 = arith.truncf %23 : vector<1x256xf32> to vector<1x256xbf16>
    %25 = vector.broadcast %24 : vector<1x256xbf16> to vector<16x256xbf16>
    %26 = arith.addf %22, %25 : vector<16x256xbf16>
    %cst_13 = arith.constant 0.000000e+00 : bf16
    %27 = vector.broadcast %cst_13 : bf16 to vector<16x256xbf16>
    %28 = arith.maximumf %26, %27 : vector<16x256xbf16>
    %c96 = arith.constant 96 : index
    %c0_14 = arith.constant 0 : index
    %29 = vector.load %arg2[%c96, %c0_14] : memref<944x256xbf16, #tpu.memory_space<vmem>>, vector<256x256xbf16>
    %cst_15 = arith.constant dense<0.000000e+00> : vector<16x256xf32>
    %30 = tpu.matmul %28, %29, %cst_15 {dimension_numbers = #tpu.dot_dimension_numbers<[1], [0], [0], [1], [0, 0, 1, 1], [], []>} : vector<16x256xbf16>, vector<256x256xbf16>, vector<16x256xf32> -> vector<16x256xf32>
    %31 = arith.truncf %30 : vector<16x256xf32> to vector<16x256xbf16>
    %c3 = arith.constant 3 : index
    %c0_16 = arith.constant 0 : index
    %32 = vector.load %arg3[%c3, %c0_16] : memref<8x256xf32, #tpu.memory_space<vmem>>, vector<1x256xf32>
    %33 = arith.truncf %32 : vector<1x256xf32> to vector<1x256xbf16>
    %34 = vector.broadcast %33 : vector<1x256xbf16> to vector<16x256xbf16>
    %35 = arith.addf %31, %34 : vector<16x256xbf16>
    %cst_17 = arith.constant 0.000000e+00 : bf16
    %36 = vector.broadcast %cst_17 : bf16 to vector<16x256xbf16>
    %37 = arith.maximumf %35, %36 : vector<16x256xbf16>
    %c352 = arith.constant 352 : index
    %c0_18 = arith.constant 0 : index
    %38 = vector.load %arg2[%c352, %c0_18] : memref<944x256xbf16, #tpu.memory_space<vmem>>, vector<256x256xbf16>
    %cst_19 = arith.constant dense<0.000000e+00> : vector<16x256xf32>
    %39 = tpu.matmul %37, %38, %cst_19 {dimension_numbers = #tpu.dot_dimension_numbers<[1], [0], [0], [1], [0, 0, 1, 1], [], []>} : vector<16x256xbf16>, vector<256x256xbf16>, vector<16x256xf32> -> vector<16x256xf32>
    %40 = arith.truncf %39 : vector<16x256xf32> to vector<16x256xbf16>
    %c4 = arith.constant 4 : index
    %c0_20 = arith.constant 0 : index
    %41 = vector.load %arg3[%c4, %c0_20] : memref<8x256xf32, #tpu.memory_space<vmem>>, vector<1x256xf32>
    %42 = arith.truncf %41 : vector<1x256xf32> to vector<1x256xbf16>
    %43 = vector.broadcast %42 : vector<1x256xbf16> to vector<16x256xbf16>
    %44 = arith.addf %40, %43 : vector<16x256xbf16>
    %cst_21 = arith.constant 0.000000e+00 : bf16
    %45 = vector.broadcast %cst_21 : bf16 to vector<16x256xbf16>
    %46 = arith.maximumf %44, %45 : vector<16x256xbf16>
    %c608 = arith.constant 608 : index
    %c0_22 = arith.constant 0 : index
    %47 = vector.load %arg2[%c608, %c0_22] : memref<944x256xbf16, #tpu.memory_space<vmem>>, vector<256x64xbf16>
    %cst_23 = arith.constant dense<0.000000e+00> : vector<16x64xf32>
    %48 = tpu.matmul %46, %47, %cst_23 {dimension_numbers = #tpu.dot_dimension_numbers<[1], [0], [0], [1], [0, 0, 1, 1], [], []>} : vector<16x256xbf16>, vector<256x64xbf16>, vector<16x64xf32> -> vector<16x64xf32>
    %49 = arith.truncf %48 : vector<16x64xf32> to vector<16x64xbf16>
    %c5 = arith.constant 5 : index
    %c0_24 = arith.constant 0 : index
    %50 = vector.load %arg3[%c5, %c0_24] : memref<8x256xf32, #tpu.memory_space<vmem>>, vector<1x64xf32>
    %51 = arith.truncf %50 : vector<1x64xf32> to vector<1x64xbf16>
    %52 = vector.broadcast %51 : vector<1x64xbf16> to vector<16x64xbf16>
    %53 = arith.addf %49, %52 : vector<16x64xbf16>
    %cst_25 = arith.constant 0.000000e+00 : bf16
    %54 = vector.broadcast %cst_25 : bf16 to vector<16x64xbf16>
    %55 = arith.maximumf %53, %54 : vector<16x64xbf16>
    %c864 = arith.constant 864 : index
    %c0_26 = arith.constant 0 : index
    %56 = vector.load %arg2[%c864, %c0_26] : memref<944x256xbf16, #tpu.memory_space<vmem>>, vector<64x16xbf16>
    %cst_27 = arith.constant dense<0.000000e+00> : vector<16x16xf32>
    %57 = tpu.matmul %55, %56, %cst_27 {dimension_numbers = #tpu.dot_dimension_numbers<[1], [0], [0], [1], [0, 0, 1, 1], [], []>} : vector<16x64xbf16>, vector<64x16xbf16>, vector<16x16xf32> -> vector<16x16xf32>
    %58 = arith.truncf %57 : vector<16x16xf32> to vector<16x16xbf16>
    %c6 = arith.constant 6 : index
    %c0_28 = arith.constant 0 : index
    %59 = vector.load %arg3[%c6, %c0_28] : memref<8x256xf32, #tpu.memory_space<vmem>>, vector<1x16xf32>
    %60 = arith.truncf %59 : vector<1x16xf32> to vector<1x16xbf16>
    %61 = vector.broadcast %60 : vector<1x16xbf16> to vector<16x16xbf16>
    %62 = arith.addf %58, %61 : vector<16x16xbf16>
    %cst_29 = arith.constant 0.000000e+00 : bf16
    %63 = vector.broadcast %cst_29 : bf16 to vector<16x16xbf16>
    %64 = arith.maximumf %62, %63 : vector<16x16xbf16>
    %c928 = arith.constant 928 : index
    %c0_30 = arith.constant 0 : index
    %65 = vector.load %arg2[%c928, %c0_30] : memref<944x256xbf16, #tpu.memory_space<vmem>>, vector<8x16xbf16>
    %cst_31 = arith.constant dense<0.000000e+00> : vector<8x16xf32>
    %66 = tpu.matmul %65, %64, %cst_31 {dimension_numbers = #tpu.dot_dimension_numbers<[1], [1], [0], [0], [0, 0, 1, 0], [], []>} : vector<8x16xbf16>, vector<16x16xbf16>, vector<8x16xf32> -> vector<8x16xf32>
    %c0_32 = arith.constant 0 : index
    %c0_33 = arith.constant 0 : index
    %67 = vector.load %arg4[%c0_32, %c0_33] : memref<8x1xf32, #tpu.memory_space<vmem>>, vector<8x1xf32>
    %68 = vector.broadcast %67 : vector<8x1xf32> to vector<8x16xf32>
    %69 = arith.addf %66, %68 : vector<8x16xf32>
    %70 = math.tanh %69 : vector<8x16xf32>
    %c0_34 = arith.constant 0 : index
    %c0_35 = arith.constant 0 : index
    %71 = vector.load %arg5[%c0_34, %c0_35] : memref<8x16xf32, #tpu.memory_space<vmem>>, vector<8x16xf32>
    tpu.vector_store %arg5[%c0_34, %c0_35], %70 {strides = array<i32>} : memref<8x16xf32, #tpu.memory_space<vmem>>, vector<8x16xf32>,
    return
  }
  func.func @transform_0(%arg0: i32) -> (i32, i32) {
    %c0_i32 = arith.constant 0 : i32
    %c0_i32_0 = arith.constant 0 : i32
    return %arg0, %c0_i32 : i32, i32
  }
  func.func @transform_1(%arg0: i32) -> (i32, i32) {
    %c0_i32 = arith.constant 0 : i32
    %c0_i32_0 = arith.constant 0 : i32
    %c0_i32_1 = arith.constant 0 : i32
    return %c0_i32, %c0_i32_0 : i32, i32
  }
  func.func @transform_2(%arg0: i32) -> (i32, i32) {
    %c0_i32 = arith.constant 0 : i32
    %c0_i32_0 = arith.constant 0 : i32
    %c0_i32_1 = arith.constant 0 : i32
    return %c0_i32, %c0_i32_0 : i32, i32
  }
  func.func @transform_3(%arg0: i32) -> (i32, i32) {
    %c0_i32 = arith.constant 0 : i32
    %c0_i32_0 = arith.constant 0 : i32
    %c0_i32_1 = arith.constant 0 : i32
    return %c0_i32, %c0_i32_0 : i32, i32
  }
  func.func @transform_4(%arg0: i32) -> (i32, i32) {
    %c0_i32 = arith.constant 0 : i32
    %c0_i32_0 = arith.constant 0 : i32
    return %c0_i32, %arg0 : i32, i32
  }
}

</mosaic_0001>

<bundles_post_ra>
// kernel: tpu_custom_call.1
= control target key start
LH: loop header
LB: loop body
LE: loop exit
PB: predicated region body
PF: predicated region fallthrough
CT: control target
= control target key end

     0   :  { %9 = vsyncpa [#allocation3], 0  ;;  %s1630_s0 = inlined_call_operand.vmem [shape: f32[16,8], index: 0, kind: input, shape index: {}]   ;;  %s1631_s1 = inlined_call_operand.hbm [shape: bf16[944,256], index: 1, kind: input, shape index: {}]   ;;  %s1632_s2 = inlined_call_operand.vmem [shape: f32[8,256], index: 2, kind: input, shape index: {}]   ;;  %s1633_s3 = inlined_call_operand.vmem [shape: f32[8,1], index: 3, kind: input, shape index: {}]   ;;  %s1634_s4 = inlined_call_operand.hbm [shape: f32[8,16], index: 4, kind: output, shape index: {}]  }
   0x1   :  { %10 = vsyncpa [#allocation4], 0  ;;  %s1495_s15 = smov [#allocation2]   ;;  %s1447_s19 = scalar_lea.hbm %s1631_s1, 15104 }
   0x2   :  { %s18_s16 = sshll.u32 %s1495_s15, 4  ;;  %p1448_p0 = scmp.ne.s32.totalorder %s1631_s1, %s1447_s19  ;;  %s19_s16 = int_to_ptr.vmem [resolvable:$true] %s18_s16 }
   0x3   :  { %p1451_p1 = scmp.lt.u32.totalorder %s1447_s19, %s1631_s1 }
   0x5   :  { %p1453_p2 = pnand %p1451_p1, %p1448_p0 }
   0x7   :  { %1456 = shalt.err (!%p1453_p2)
}
   0x8   :  { %s1457_s24 = scalar_lea.vmem %s19_s16, 15104  ;;  %p1462_p4 = scmp.lt.s32.totalorder %s19_s16, %s19_s16 }
   0x9   :  { %p1458_p3 = scmp.ne.s32.totalorder %s19_s16, %s1457_s24  ;;  %p1463_p5 = scmp.lt.s32.totalorder %s1457_s24, %s1457_s24 }
   0xb   :  { %p1464_p6 = por %p1463_p5, %p1462_p4 }
   0xd   :  { %p1465_p7 = pnand %p1464_p6, %p1458_p3 }
   0xf   :  { %1468 = shalt.err (!%p1465_p7)
}
  0x10   :  { %s1496_s25 = smov 128   ;;  %s1497_s26 = smov 8  }
  0x11   :  { %24 = dma.hbm_to_vmem [thread:$0]  %s1631_s1, 15104, %s19_s16, [#allocation3], %s1496_s25, %s1496_s25, %s1497_s26  }
  0x12   :  { %1491 = dma.done.wait [#allocation3], 15104  }
  0x13   :  { %1492 = vsyncadd [#allocation3], 4294952192  ;;  %v1498_v0 = vmov 0.0   ;;  %vm1499_vm0 = vmmov 0   ;;  %vm41_vm1 = vcmask 1043456   ;;  %v33_v2 = vld [vmem:[%s1630_s0] sm:$0xff] }
  0x14   :  { %1278 = vmatprep.subr.bf16.mxu0 %v1498_v0  ;;  %1280 = vmatprep.mubr.msk.bf16.mxu0 %vm1499_vm0, %v1498_v0  ;;  %v36_v1 = vld [vmem:[#allocation2] sm:$0xf]  ;;  %v34_v3 = vld [vmem:[%s1630_s0 + $0x8] sm:$0xff]  ;;  %vm37_vm2 = vcmask 64512   ;;  %v1316_v6 = vld [vmem:[#allocation2 + $0x10] ss:$8 sps:$4 sm:$0xff]  }
  0x15   :  { %1284 = vmatprep.subr.bf16.mxu1 %v1498_v0  ;;  %1286 = vmatprep.mubr.msk.bf16.mxu1 %vm1499_vm0, %v1498_v0  ;;  %v43_v4 = vsel %vm41_vm1, %v36_v1, 0  ;;  %v35_v5 = vpack.c.bf16 %v34_v3, %v33_v2  ;;  %v1500_v7 = vmov 0   ;;  %v1317_v8 = vld [vmem:[#allocation2 + $0x20] ss:$8 sps:$4 sm:$0xff]   ;;  %v1319_v9 = vld [vmem:[#allocation2 + $0x24] ss:$8 sps:$4 sm:$0xff]  }
  0x16   :  { %1279 = vmatpush3.bf16.msra.mxu0 %v43_v4  ;;  %1285 = vmatpush3.bf16.msra.mxu1 %v1316_v6  ;;  %v1322_v10 = vld [vmem:[#allocation2 + $0x34] ss:$8 sps:$4 sm:$0xff]   ;;  %v1320_v11 = vld [vmem:[#allocation2 + $0x30] ss:$8 sps:$4 sm:$0xff]   ;;  %v87_v12 = vld [vmem:[%s1632_s2] ss:$0 sm:$0xff] }
  0x17   :  { %1315 = vset.pattern.permute.xlu0 %v1500_v7  ;;  %201 = vmatprep.subr.bf16.mxu0 %v1319_v9  ;;  %v88_v15 = vpack.c.bf16 %v87_v12, %v87_v12  ;;  %vm99_vm3 = vcmask 130048   ;;  %v1325_v21 = vld [vmem:[#allocation2 + $0x44] ss:$8 sps:$4 sm:$0xff]   ;;  %v1323_v22 = vld [vmem:[#allocation2 + $0x40] ss:$8 sps:$4 sm:$0xff]   ;;  %vm197_vm4 = vcmask 523264  }
  0x18   :  { %v1328_v23 = vld [vmem:[#allocation2 + $0x54] ss:$8 sps:$4 sm:$0xff]   ;;  %v1326_v24 = vld [vmem:[#allocation2 + $0x50] ss:$8 sps:$4 sm:$0xff]   ;;  %v1329_v25 = vld [vmem:[#allocation2 + $0x60] ss:$8 sps:$4 sm:$0xff]  }
  0x19   :  { %1281 = vmatmul.mubr.msk.bf16.vlgmr.msra.gmra.mrb[0].mxu0 %vm37_vm2, %v35_v5  ;;  %v1331_v26 = vld [vmem:[#allocation2 + $0x64] ss:$8 sps:$4 sm:$0xff]   ;;  %v1334_v27 = vld [vmem:[#allocation2 + $0x74] ss:$8 sps:$4 sm:$0xff]   ;;  %v1332_v28 = vld [vmem:[#allocation2 + $0x70] ss:$8 sps:$4 sm:$0xff]  }
  0x1a   :  { %233 = vmatprep.mubr.bf16.mxu0 %v1500_v7  ;;  %202 = vmatpush1.bf16.msra.mxu0 %v1317_v8  ;;  %v1337_v29 = vld [vmem:[#allocation2 + $0x84] ss:$8 sps:$4 sm:$0xff]   ;;  %v1335_v30 = vld [vmem:[#allocation2 + $0x80] ss:$8 sps:$4 sm:$0xff]   ;;  %v1340_v31 = vld [vmem:[#allocation2 + $0x94] ss:$8 sps:$4 sm:$0xff]  }
  0x1b   :  { %203 = vmatprep.subr.bf16.mxu0 %v1322_v10  ;;  %471 = vmatprep.subr.bf16.mxu1 %v1331_v26  ;;  %v1338_v32 = vld [vmem:[#allocation2 + $0x90] ss:$8 sps:$4 sm:$0xff]   ;;  %v1343_v33 = vld [vmem:[#allocation2 + $0xa4] ss:$8 sps:$4 sm:$0xff]   ;;  %v1341_v34 = vld [vmem:[#allocation2 + $0xa0] ss:$8 sps:$4 sm:$0xff]  }
  0x1c   :  { %v1346_v35 = vld [vmem:[#allocation2 + $0xb4] ss:$8 sps:$4 sm:$0xff]   ;;  %v1344_v36 = vld [vmem:[#allocation2 + $0xb0] ss:$8 sps:$4 sm:$0xff]   ;;  %v1349_v37 = vld [vmem:[#allocation2 + $0xc4] ss:$8 sps:$4 sm:$0xff]  }
  0x1d   :  { %v1347_v38 = vld [vmem:[#allocation2 + $0xc0] ss:$8 sps:$4 sm:$0xff]   ;;  %v1352_v39 = vld [vmem:[#allocation2 + $0xd4] ss:$8 sps:$4 sm:$0xff]   ;;  %v1350_v40 = vld [vmem:[#allocation2 + $0xd0] ss:$8 sps:$4 sm:$0xff]  }
  0x1e   :  { %204 = vmatpush1.bf16.msra.mxu0 %v1320_v11  ;;  %v1355_v41 = vld [vmem:[#allocation2 + $0xe4] ss:$8 sps:$4 sm:$0xff]   ;;  %v1353_v42 = vld [vmem:[#allocation2 + $0xe0] ss:$8 sps:$4 sm:$0xff]   ;;  %v1358_v43 = vld [vmem:[#allocation2 + $0xf4] ss:$8 sps:$4 sm:$0xff]  }
  0x1f   :  { %205 = vmatprep.subr.bf16.mxu0 %v1325_v21  ;;  %v1356_v44 = vld [vmem:[#allocation2 + $0xf0] ss:$8 sps:$4 sm:$0xff]   ;;  %v1361_v45 = vld [vmem:[#allocation2 + $0x104] ss:$8 sps:$4 sm:$0xff]   ;;  %v1359_v46 = vld [vmem:[#allocation2 + $0x100] ss:$8 sps:$4 sm:$0xff]  }
  0x20   :  { %v1364_v47 = vld [vmem:[#allocation2 + $0x114] ss:$8 sps:$4 sm:$0xff]   ;;  %v1362_v48 = vld [vmem:[#allocation2 + $0x110] ss:$8 sps:$4 sm:$0xff]   ;;  %v1367_v49 = vld [vmem:[#allocation2 + $0x124] ss:$8 sps:$4 sm:$0xff]  }
  0x21   :  { %v1365_v50 = vld [vmem:[#allocation2 + $0x120] ss:$8 sps:$4 sm:$0xff]   ;;  %v1370_v51 = vld [vmem:[#allocation2 + $0x134] ss:$8 sps:$4 sm:$0xff]   ;;  %v1368_v52 = vld [vmem:[#allocation2 + $0x130] ss:$8 sps:$4 sm:$0xff]  }
  0x22   :  { %206 = vmatpush1.bf16.msra.mxu0 %v1323_v22  ;;  %v145_v53 = vld [vmem:[%s1632_s2 + $0x1] ss:$0 sm:$0xff]  ;;  %v1373_v62 = vld [vmem:[#allocation2 + $0x144] ss:$8 sps:$4 sm:$0xff]   ;;  %v1376_v1 = vld [vmem:[#allocation2 + $0x154] ss:$8 sps:$4 sm:$0xff]  }
  0x23   :  { %207 = vmatprep.subr.bf16.mxu0 %v1328_v23  ;;  %v146_v56 = vpack.c.bf16 %v145_v53, %v145_v53  ;;  %v1371_v63 = vld [vmem:[#allocation2 + $0x140] ss:$8 sps:$4 sm:$0xff]   ;;  %v1374_v2 = vld [vmem:[#allocation2 + $0x150] ss:$8 sps:$4 sm:$0xff]   ;;  %v1379_v4 = vld [vmem:[#allocation2 + $0x164] ss:$8 sps:$4 sm:$0xff]  }
  0x24   :  { %v1377_v3 = vld [vmem:[#allocation2 + $0x160] ss:$8 sps:$4 sm:$0xff]   ;;  %v1382_v5 = vld [vmem:[#allocation2 + $0x174] ss:$8 sps:$4 sm:$0xff]   ;;  %v1380_v6 = vld [vmem:[#allocation2 + $0x170] ss:$8 sps:$4 sm:$0xff]  }
  0x25   :  { %v1385_v8 = vld [vmem:[#allocation2 + $0x184] ss:$8 sps:$4 sm:$0xff]   ;;  %v1383_v9 = vld [vmem:[#allocation2 + $0x180] ss:$8 sps:$4 sm:$0xff]   ;;  %v1388_v10 = vld [vmem:[#allocation2 + $0x194] ss:$8 sps:$4 sm:$0xff]  }
  0x26   :  { %208 = vmatpush1.bf16.msra.mxu0 %v1326_v24  ;;  %v1386_v11 = vld [vmem:[#allocation2 + $0x190] ss:$8 sps:$4 sm:$0xff]   ;;  %v1391_v12 = vld [vmem:[#allocation2 + $0x1a4] ss:$8 sps:$4 sm:$0xff]   ;;  %v1401_v21 = vld [vmem:[#allocation2 + $0x1e0] ss:$8 sps:$4 sm:$0xff]  }
  0x27   :  { %741 = vmatprep.subr.bf16.mxu0 %v1379_v4  ;;  %v1406_v22 = vld [vmem:[#allocation2 + $0x1f4] ss:$8 sps:$4 sm:$0xff]   ;;  %v1404_v23 = vld [vmem:[#allocation2 + $0x1f0] ss:$8 sps:$4 sm:$0xff]   ;;  %v1409_v24 = vld [vmem:[#allocation2 + $0x204] ss:$8 sps:$4 sm:$0xff]  }
  0x28   :  { %v1412_v26 = vld [vmem:[#allocation2 + $0x214] ss:$8 sps:$4 sm:$0xff]   ;;  %v1433_v4 = vld [vmem:[#allocation2 + $0x320] ss:$8 sps:$4 sm:$0xff]  }
  0xec   :  { %v79_v13 = vpop.f32.mrb[0].mxu0 }
  0xed   :  { %v1282_v14 = vpop.f32.mrb[1].mxu0 }
  0xee   :  { %v82_v16 = vpop.f32.mrb[2].mxu0  ;;  %v1394_v14 = vld [vmem:[#allocation2 + $0x1b4] ss:$8 sps:$4 sm:$0xff]  }
  0xef   :  { %v86_v17 = vpack.c.bf16 %v82_v16, %v79_v13  ;;  %v1283_v18 = vpop.f32.mrb[3].mxu0  ;;  %v1389_v13 = vld [vmem:[#allocation2 + $0x1a0] ss:$8 sps:$4 sm:$0xff]   ;;  %v1397_v16 = vld [vmem:[#allocation2 + $0x1c4] ss:$8 sps:$4 sm:$0xff]  }
  0xf0   :  { %v1400_v18 = vld [vmem:[#allocation2 + $0x1d4] ss:$8 sps:$4 sm:$0xff]  }
  0xf1   :  { %v89_v19 = vadd.bf16 %v88_v15, %v86_v17  ;;  %v1392_v15 = vld [vmem:[#allocation2 + $0x1b0] ss:$8 sps:$4 sm:$0xff]   ;;  %v1395_v17 = vld [vmem:[#allocation2 + $0x1c0] ss:$8 sps:$4 sm:$0xff]  }
  0xf3   :  { %v90_v20 = vmax.bf16 %v1500_v7, %v89_v19  ;;  %v1398_v19 = vld [vmem:[#allocation2 + $0x1d0] ss:$8 sps:$4 sm:$0xff]  }
  0xf5   :  { %1287 = vmatmul.mubr.msk.bf16.vlgmr.msra.gmra.mrb[0].mxu1 %vm99_vm3, %v90_v20  ;;  %v1403_v20 = vld [vmem:[#allocation2 + $0x1e4] ss:$8 sps:$4 sm:$0xff]  }
  0xf6   :  { %472 = vmatpush1.bf16.msra.mxu1 %v1329_v25  ;;  %v1407_v25 = vld [vmem:[#allocation2 + $0x200] ss:$8 sps:$4 sm:$0xff]  }
  0xf7   :  { %473 = vmatprep.subr.bf16.mxu1 %v1334_v27  ;;  %v1410_v27 = vld [vmem:[#allocation2 + $0x210] ss:$8 sps:$4 sm:$0xff]  }
  0xfa   :  { %474 = vmatpush1.bf16.msra.mxu1 %v1332_v28  ;;  %v1415_v28 = vld [vmem:[#allocation2 + $0x224] ss:$8 sps:$4 sm:$0xff]  }
  0xfb   :  { %475 = vmatprep.subr.bf16.mxu1 %v1337_v29  ;;  %v1413_v29 = vld [vmem:[#allocation2 + $0x220] ss:$8 sps:$4 sm:$0xff]  }
  0xfe   :  { %476 = vmatpush1.bf16.msra.mxu1 %v1335_v30  ;;  %v1418_v30 = vld [vmem:[#allocation2 + $0x234] ss:$8 sps:$4 sm:$0xff]  }
  0xff   :  { %477 = vmatprep.subr.bf16.mxu1 %v1340_v31  ;;  %v1416_v31 = vld [vmem:[#allocation2 + $0x230] ss:$8 sps:$4 sm:$0xff]  }
 0x102   :  { %478 = vmatpush1.bf16.msra.mxu1 %v1338_v32  ;;  %v249_v32 = vlaneseq }
 0x103   :  { %479 = vmatprep.subr.bf16.mxu1 %v1343_v33 }
 0x104   :  { %v250_v33 = vshrl.u32 %v249_v32, 7  ;;  %v1441_v32 = vld [vmem:[#allocation2 + $0x360] ss:$8 sps:$4 sm:$0xff]  }
 0x106   :  { %480 = vmatpush1.bf16.msra.mxu1 %v1341_v34  ;;  %v1563_v34 = vsub.s32 0, %v250_v33 }
 0x107   :  { %481 = vmatprep.subr.bf16.mxu1 %v1346_v35  ;;  %v1156_v35 = vld [vmem:[%s1632_s2 + $0x2] ss:$8 sm:$0x3] }
 0x10a   :  { %482 = vmatpush1.bf16.msra.mxu1 %v1344_v36  ;;  %v1568_v36 = vsub.s32 1, %v250_v33  ;;  %v1222_v33 = vld [vmem:[%s1632_s2 + $0x4] ss:$8 sm:$0x3] }
 0x10b   :  { %483 = vmatprep.subr.bf16.mxu1 %v1349_v37  ;;  %v252_v37 = vrot.slane %v1156_v35, %v1563_v34 }
 0x10e   :  { %484 = vmatpush1.bf16.msra.mxu1 %v1347_v38  ;;  %v256_v38 = vrot.slane %v1156_v35, %v1568_v36  ;;  %v792_v35 = vrot.slane %v1222_v33, %v1563_v34 }
 0x10f   :  { %485 = vmatprep.subr.bf16.mxu1 %v1352_v39  ;;  %v259_v39 = vpack.c.bf16 %v252_v37, %v252_v37  ;;  %v796_v37 = vrot.slane %v1222_v33, %v1568_v36 }
 0x112   :  { %486 = vmatpush1.bf16.msra.mxu1 %v1350_v40  ;;  %v260_v40 = vpack.c.bf16 %v256_v38, %v256_v38  ;;  %v799_v38 = vpack.c.bf16 %v792_v35, %v792_v35 }
 0x113   :  { %487 = vmatprep.subr.bf16.mxu1 %v1355_v41  ;;  %v262_v41 = vpack.i.b16 %v259_v39, %v259_v39  ;;  %v800_v39 = vpack.c.bf16 %v796_v37, %v796_v37 }
 0x116   :  { %488 = vmatpush1.bf16.msra.mxu1 %v1353_v42  ;;  %v269_v42 = vpack.i.b16 %v260_v40, %v260_v40  ;;  %v802_v40 = vpack.i.b16 %v799_v38, %v799_v38 }
 0x117   :  { %489 = vmatprep.subr.bf16.mxu1 %v1358_v43 }
 0x11a   :  { %490 = vmatpush1.bf16.msra.mxu1 %v1356_v44 }
 0x11b   :  { %491 = vmatprep.subr.bf16.mxu1 %v1361_v45  ;;  %v267_v45 = vrot.slane %v262_v41, %v1563_v34  ;;  %v809_v41 = vpack.i.b16 %v800_v39, %v800_v39 }
 0x11e   :  { %492 = vmatpush1.bf16.msra.mxu1 %v1359_v46 }
 0x11f   :  { %493 = vmatprep.subr.bf16.mxu1 %v1364_v47  ;;  %v274_v47 = vrot.slane %v269_v42, %v1563_v34 }
 0x122   :  { %494 = vmatpush1.bf16.msra.mxu1 %v1362_v48 }
 0x123   :  { %495 = vmatprep.subr.bf16.mxu1 %v1367_v49 }
 0x126   :  { %496 = vmatpush1.bf16.msra.mxu1 %v1365_v50 }
 0x127   :  { %497 = vmatprep.subr.bf16.mxu1 %v1370_v51 }
 0x12a   :  { %498 = vmatpush1.bf16.msra.mxu1 %v1368_v52 }
 0x12b   :  { %499 = vmatprep.subr.bf16.mxu1 %v1373_v62  ;;  %v1428_v62 = vld [vmem:[#allocation2 + $0x270] ss:$8 sps:$4 sm:$0xff]  }
 0x12e   :  { %500 = vmatpush1.bf16.msra.mxu1 %v1371_v63  ;;  %v1429_v63 = vld [vmem:[#allocation2 + $0x300] ss:$8 sps:$4 sm:$0xff]  }
 0x12f   :  { %501 = vmatprep.subr.bf16.mxu1 %v1376_v1  ;;  %v1430_v1 = vld [vmem:[#allocation2 + $0x280] ss:$8 sps:$4 sm:$0xff]  }
 0x132   :  { %502 = vmatpush1.bf16.msra.mxu1 %v1374_v2  ;;  %v1431_v2 = vld [vmem:[#allocation2 + $0x310] ss:$8 sps:$4 sm:$0xff]  }
 0x1c8   :  { %v137_v54 = vpop.f32.mrb[0].mxu1 }
 0x1c9   :  { %v1288_v55 = vpop.f32.mrb[1].mxu1 }
 0x1ca   :  { %v140_v57 = vpop.f32.mrb[2].mxu1  ;;  %v1421_v55 = vld [vmem:[#allocation2 + $0x244] ss:$8 sps:$4 sm:$0xff]  }
 0x1cb   :  { %v144_v58 = vpack.c.bf16 %v140_v57, %v137_v54  ;;  %v1289_v59 = vpop.f32.mrb[3].mxu1  ;;  %v1424_v57 = vld [vmem:[#allocation2 + $0x254] ss:$8 sps:$4 sm:$0xff]  }
 0x1cc   :  { %v1425_v59 = vld [vmem:[#allocation2 + $0x2e0] ss:$8 sps:$4 sm:$0xff]  }
 0x1cd   :  { %v147_v60 = vadd.bf16 %v146_v56, %v144_v58  ;;  %v1419_v56 = vld [vmem:[#allocation2 + $0x240] ss:$8 sps:$4 sm:$0xff]   ;;  %v1422_v58 = vld [vmem:[#allocation2 + $0x250] ss:$8 sps:$4 sm:$0xff]   ;;  %1249 = vmatprep.subr.bf16.mxu1 %v1425_v59 }
 0x1cf   :  { %v148_v61 = vmax.bf16 %v1500_v7, %v147_v60  ;;  %v1426_v60 = vld [vmem:[#allocation2 + $0x260] ss:$8 sps:$4 sm:$0xff]  }
 0x1d1   :  { %1155 = vmatmul.mubr.msk.bf16.vlgmr.msra.gmra.mrb[4].mxu0 %vm197_vm4, %v148_v61  ;;  %v1427_v61 = vld [vmem:[#allocation2 + $0x2f0] ss:$8 sps:$4 sm:$0xff]  }
 0x1d2   :  { %742 = vmatpush1.bf16.msra.mxu0 %v1377_v3  ;;  %v1432_v3 = vld [vmem:[#allocation2 + $0x290] ss:$8 sps:$4 sm:$0xff]  }
 0x1d3   :  { %743 = vmatprep.subr.bf16.mxu0 %v1382_v5  ;;  %v1434_v5 = vld [vmem:[#allocation2 + $0x2a0] ss:$8 sps:$4 sm:$0xff]  }
 0x1d6   :  { %744 = vmatpush1.bf16.msra.mxu0 %v1380_v6  ;;  %v1435_v6 = vld [vmem:[#allocation2 + $0x330] ss:$8 sps:$4 sm:$0xff]  }
 0x1d7   :  { %745 = vmatprep.subr.bf16.mxu0 %v1385_v8  ;;  %v1189_v8 = vld [vmem:[%s1632_s2 + $0x3] ss:$8 sm:$0x3] }
 0x1da   :  { %746 = vmatpush1.bf16.msra.mxu0 %v1383_v9  ;;  %v522_v9 = vrot.slane %v1189_v8, %v1563_v34 }
 0x1db   :  { %747 = vmatprep.subr.bf16.mxu0 %v1388_v10  ;;  %v526_v10 = vrot.slane %v1189_v8, %v1568_v36 }
 0x1de   :  { %748 = vmatpush1.bf16.msra.mxu0 %v1386_v11  ;;  %v529_v11 = vpack.c.bf16 %v522_v9, %v522_v9 }
 0x1df   :  { %749 = vmatprep.subr.bf16.mxu0 %v1391_v12  ;;  %v530_v12 = vpack.c.bf16 %v526_v10, %v526_v10 }
 0x1e2   :  { %750 = vmatpush1.bf16.msra.mxu0 %v1389_v13  ;;  %v532_v13 = vpack.i.b16 %v529_v11, %v529_v11 }
 0x1e3   :  { %751 = vmatprep.subr.bf16.mxu0 %v1394_v14  ;;  %v539_v14 = vpack.i.b16 %v530_v12, %v530_v12 }
 0x1e6   :  { %752 = vmatpush1.bf16.msra.mxu0 %v1392_v15 }
 0x1e7   :  { %753 = vmatprep.subr.bf16.mxu0 %v1397_v16 }
 0x1ea   :  { %754 = vmatpush1.bf16.msra.mxu0 %v1395_v17  ;;  %v537_v17 = vrot.slane %v532_v13, %v1563_v34 }
 0x1eb   :  { %755 = vmatprep.subr.bf16.mxu0 %v1400_v18 }
 0x1ee   :  { %756 = vmatpush1.bf16.msra.mxu0 %v1398_v19  ;;  %v544_v19 = vrot.slane %v539_v14, %v1563_v34  ;;  %v1074_v14 = vld [vmem:[#allocation2 + $0x3a0] sm:$0xf] }
 0x1ef   :  { %757 = vmatprep.subr.bf16.mxu0 %v1403_v20 }
 0x1f2   :  { %758 = vmatpush1.bf16.msra.mxu0 %v1401_v21 }
 0x1f3   :  { %759 = vmatprep.subr.bf16.mxu0 %v1406_v22 }
 0x1f6   :  { %760 = vmatpush1.bf16.msra.mxu0 %v1404_v23 }
 0x1f7   :  { %761 = vmatprep.subr.bf16.mxu0 %v1409_v24 }
 0x1fa   :  { %762 = vmatpush1.bf16.msra.mxu0 %v1407_v25 }
 0x1fb   :  { %763 = vmatprep.subr.bf16.mxu0 %v1412_v26 }
 0x1fe   :  { %764 = vmatpush1.bf16.msra.mxu0 %v1410_v27  ;;  %v1436_v27 = vld [vmem:[#allocation2 + $0x2b0] ss:$8 sps:$4 sm:$0xff]  }
 0x1ff   :  { %765 = vmatprep.subr.bf16.mxu0 %v1415_v28  ;;  %v1437_v28 = vld [vmem:[#allocation2 + $0x340] ss:$8 sps:$4 sm:$0xff]  }
 0x202   :  { %766 = vmatpush1.bf16.msra.mxu0 %v1413_v29  ;;  %v1438_v29 = vld [vmem:[#allocation2 + $0x2c0] ss:$8 sps:$4 sm:$0xff]  }
 0x203   :  { %767 = vmatprep.subr.bf16.mxu0 %v1418_v30  ;;  %v1439_v30 = vld [vmem:[#allocation2 + $0x350] ss:$8 sps:$4 sm:$0xff]  }
 0x206   :  { %768 = vmatpush1.bf16.msra.mxu0 %v1416_v31  ;;  %v1440_v31 = vld [vmem:[#allocation2 + $0x2d0] ss:$8 sps:$4 sm:$0xff]  }
 0x207   :  { %769 = vmatprep.subr.bf16.mxu0 %v1421_v55 }
 0x20a   :  { %770 = vmatpush1.bf16.msra.mxu0 %v1419_v56 }
 0x20b   :  { %771 = vmatprep.subr.bf16.mxu0 %v1424_v57  ;;  %v989_v57 = vld [vmem:[%s1632_s2 + $0x5] ss:$0 sm:$0xff] }
 0x20e   :  { %772 = vmatpush1.bf16.msra.mxu0 %v1422_v58 }
 0x20f   :  { %1290 = vmatprep.subr.bf16.mxu0 %v1498_v0 }
 0x2a4   :  { %v235_v43 = vpop.f32.mrb[4].mxu0 }
 0x2a5   :  { %v237_v44 = vpop.f32.mrb[5].mxu0 }
 0x2a6   :  { %v239_v46 = vpop.f32.mrb[6].mxu0 }
 0x2a7   :  { %v244_v48 = vpack.c.bf16 %v239_v46, %v235_v43  ;;  %v241_v49 = vpop.f32.mrb[7].mxu0  ;;  %v814_v46 = vrot.slane %v809_v41, %v1563_v34 }
 0x2a8   :  { %v245_v50 = vpack.c.bf16 %v241_v49, %v237_v44  ;;  %v807_v44 = vrot.slane %v802_v40, %v1563_v34  ;;  %v1444_v34 = vld [vmem:[#allocation2 + $0x390] ss:$8 sps:$4 sm:$0xff]  }
 0x2a9   :  { %v275_v51 = vadd.bf16 %v267_v45, %v244_v48 }
 0x2aa   :  { %v276_v52 = vadd.bf16 %v274_v47, %v245_v50 }
 0x2ab   :  { %v277_v54 = vmax.bf16 %v1500_v7, %v275_v51 }
 0x2ac   :  { %v278_v53 = vmax.bf16 %v1500_v7, %v276_v52 }
 0x2ae   :  { %503 = vmatprep.mubr.bf16.mxu1 %v278_v53  ;;  %v1442_v53 = vld [vmem:[#allocation2 + $0x370] ss:$8 sps:$4 sm:$0xff]  }
 0x2af   :  { %504 = vmatmul.mubr.bf16.vlgmr.msra.gmra.mrb[4].mxu1 %v277_v54  ;;  %v1443_v54 = vld [vmem:[#allocation2 + $0x380] ss:$8 sps:$4 sm:$0xff]  }
 0x2b0   :  { %1250 = vmatpush3.bf16.msra.mxu1 %v1426_v60 }
 0x2b1   :  { %1251 = vmatprep.subr.bf16.mxu1 %v1427_v61 }
 0x2b4   :  { %1252 = vmatpush3.bf16.msra.mxu1 %v1428_v62  ;;  %v990_v62 = vpack.c.bf16 %v989_v57, %v989_v57 }
 0x2b5   :  { %1253 = vmatprep.subr.bf16.mxu1 %v1429_v63 }
 0x2b8   :  { %1254 = vmatpush3.bf16.msra.mxu1 %v1430_v1 }
 0x2b9   :  { %1255 = vmatprep.subr.bf16.mxu1 %v1431_v2 }
 0x2bc   :  { %1256 = vmatpush3.bf16.msra.mxu1 %v1432_v3  ;;  %v1075_v3 = vld [vmem:[%s1633_s3] sm:$0xff] }
 0x2bd   :  { %1257 = vmatprep.subr.bf16.mxu1 %v1433_v4  ;;  %1078 = vperm.xlu0 %1315, %v1075_v3   ;;  %v1070_v4 = vld [vmem:[%s1632_s2 + $0x6] ss:$0 sm:$0xff]  ;;  %s1501_s2 = smov [#allocation5]  }
 0x2be   :  { %v1071_v8 = vpack.c.bf16 %v1070_v4, %v1070_v4  ;;  %s1135_s3 = sshll.u32 %s1501_s2, 4  ;;  %s1136_s3 = int_to_ptr.vmem [resolvable:$true] %s1135_s3 }
 0x2bf   :  { %s1469_s21 = scalar_lea.vmem %s1136_s3, 128  ;;  %p1474_p9 = scmp.lt.s32.totalorder %s1136_s3, %s1136_s3 }
 0x2c0   :  { %1258 = vmatpush3.bf16.msra.mxu1 %v1434_v5  ;;  %p1470_p8 = scmp.ne.s32.totalorder %s1136_s3, %s1469_s21  ;;  %p1475_p10 = scmp.lt.s32.totalorder %s1469_s21, %s1469_s21 }
 0x2c1   :  { %1259 = vmatprep.subr.bf16.mxu1 %v1435_v6 }
 0x2c2   :  { %p1476_p11 = por %p1475_p10, %p1474_p9 }
 0x2c4   :  { %1260 = vmatpush3.bf16.msra.mxu1 %v1436_v27  ;;  %p1477_p12 = pnand %p1476_p11, %p1470_p8 }
 0x2c5   :  { %1261 = vmatprep.subr.bf16.mxu1 %v1437_v28 }
 0x2c8   :  { %1262 = vmatpush3.bf16.msra.mxu1 %v1438_v29 }
 0x2c9   :  { %1263 = vmatprep.subr.bf16.mxu1 %v1439_v30 }
 0x2cc   :  { %1264 = vmatpush3.bf16.msra.mxu1 %v1440_v31 }
 0x382   :  { %v505_v15 = vpop.f32.mrb[4].mxu1 }
 0x383   :  { %v507_v16 = vpop.f32.mrb[5].mxu1 }
 0x384   :  { %v509_v18 = vpop.f32.mrb[6].mxu1 }
 0x385   :  { %v514_v20 = vpack.c.bf16 %v509_v18, %v505_v15  ;;  %v511_v21 = vpop.f32.mrb[7].mxu1  ;;  %v1079_v15 = vpop.permute.xlu0 %1078 }
 0x386   :  { %v515_v22 = vpack.c.bf16 %v511_v21, %v507_v16 }
 0x387   :  { %v545_v23 = vadd.bf16 %v537_v17, %v514_v20 }
 0x388   :  { %v546_v24 = vadd.bf16 %v544_v19, %v515_v22 }
 0x389   :  { %v547_v26 = vmax.bf16 %v1500_v7, %v545_v23 }
 0x38a   :  { %v548_v25 = vmax.bf16 %v1500_v7, %v546_v24 }
 0x38c   :  { %773 = vmatprep.mubr.bf16.mxu0 %v548_v25 }
 0x38d   :  { %774 = vmatmul.mubr.bf16.vlgmr.msra.gmra.mrb[8].mxu0 %v547_v26 }
 0x38e   :  { %1298 = vmatprep.mubr.msk.bf16.mxu0 %vm1499_vm0, %v1498_v0  ;;  %1291 = vmatpush3.bf16.msra.mxu0 %v1441_v32 }
 0x38f   :  { %1292 = vmatprep.subr.bf16.mxu0 %v1498_v0 }
 0x392   :  { %1293 = vmatpush3.bf16.msra.mxu0 %v1442_v53 }
 0x393   :  { %1294 = vmatprep.subr.bf16.mxu0 %v1498_v0 }
 0x396   :  { %1295 = vmatpush3.bf16.msra.mxu0 %v1443_v54 }
 0x397   :  { %1296 = vmatprep.subr.bf16.mxu0 %v1498_v0 }
 0x39a   :  { %1297 = vmatpush3.bf16.msra.mxu0 %v1444_v34 }
 0x39b   :  { %1302 = vmatprep.subr.bf16.mxu0 %v1498_v0 }
 0x460   :  { %v775_v42 = vpop.f32.mrb[8].mxu0 }
 0x461   :  { %v777_v43 = vpop.f32.mrb[9].mxu0 }
 0x462   :  { %v779_v45 = vpop.f32.mrb[10].mxu0 }
 0x463   :  { %v784_v47 = vpack.c.bf16 %v779_v45, %v775_v42  ;;  %v781_v48 = vpop.f32.mrb[11].mxu0 }
 0x464   :  { %v785_v49 = vpack.c.bf16 %v781_v48, %v777_v43 }
 0x465   :  { %v815_v50 = vadd.bf16 %v807_v44, %v784_v47 }
 0x466   :  { %v816_v51 = vadd.bf16 %v814_v46, %v785_v49 }
 0x467   :  { %v817_v36 = vmax.bf16 %v1500_v7, %v815_v50 }
 0x468   :  { %v818_v52 = vmax.bf16 %v1500_v7, %v816_v51 }
 0x46a   :  { %979 = vmatprep.mubr.bf16.mxu1 %v818_v52 }
 0x46b   :  { %980 = vmatmul.mubr.bf16.vlgmr.msra.gmra.mrb[8].mxu1 %v817_v36 }
 0x53e   :  { %v1265_v55 = vpop.f32.mrb[8].mxu1 }
 0x53f   :  { %v1266_v56 = vpop.f32.mrb[9].mxu1 }
 0x540   :  { %v1267_v58 = vadd.f32 %v1266_v56, %v1265_v55  ;;  %v1268_v59 = vpop.f32.mrb[10].mxu1 }
 0x541   :  { %v1269_v60 = vpop.f32.mrb[11].mxu1 }
 0x542   :  { %v1270_v61 = vadd.f32 %v1269_v60, %v1268_v59 }
 0x544   :  { %v988_v63 = vpack.c.bf16 %v1270_v61, %v1267_v58 }
 0x546   :  { %v991_v1 = vadd.bf16 %v990_v62, %v988_v63 }
 0x548   :  { %v992_v2 = vmax.bf16 %v1500_v7, %v991_v1 }
 0x54a   :  { %1299 = vmatmul.mubr.msk.bf16.vlgmr.msra.gmra.mrb[12].mxu0 %vm197_vm4, %v992_v2 }
 0x54b   :  { %1304 = vmatprep.mubr.msk.bf16.mxu0 %vm1499_vm0, %v1498_v0 }
 0x61d   :  { %v1062_v5 = vpop.f32.mrb[12].mxu0 }
 0x61e   :  { %v1300_v6 = vpop.f32.mrb[13].mxu0 }
 0x61f   :  { %v1065_v9 = vpop.f32.mrb[14].mxu0 }
 0x620   :  { %v1069_v10 = vpack.c.bf16 %v1065_v9, %v1062_v5  ;;  %v1301_v11 = vpop.f32.mrb[15].mxu0 }
 0x622   :  { %v1072_v12 = vadd.bf16 %v1071_v8, %v1069_v10 }
 0x624   :  { %v1073_v13 = vmax.bf16 %v1500_v7, %v1072_v12 }
 0x626   :  { %v1085_v0 = vsel %vm99_vm3, %v1073_v13, 0 }
 0x627   :  { %1303 = vmatpush3.bf16.xpose.msra.mxu0 %v1085_v0 }
 0x62e   :  { %1305 = vmatmul.mubr.msk.bf16.vlgmr.msra.gmra.mrb[16].mxu0 %vm99_vm3, %v1074_v14 }
 0x701   :  { %v1121_v16 = vpop.f32.mrb[16].mxu0 }
 0x702   :  { %v1122_v17 = vadd.f32 %v1121_v16, %v1079_v15  ;;  %v1306_v18 = vpop.f32.mrb[17].mxu0 }
 0x703   :  { %v1124_v19 = vpop.f32.mrb[18].mxu0 }
 0x704   :  { %1445 = vtanh.f32 %v1122_v17  ;;  %v1307_v20 = vpop.f32.mrb[19].mxu0 }
 0x70e   :  { %v1446_v21 = vpop.eup %1445 }
 0x70f   :  { %1128 = vst.msk [vmem:[#allocation5] sm:$0xff] %vm99_vm3, %v1446_v21 }
 0x710   :  { %1480 = shalt.err (!%p1477_p12)
}
 0x711   :  { %s1481_s24 = scalar_lea.hbm %s1634_s4, 128 }
 0x712   :  { %p1482_p13 = scmp.ne.s32.totalorder %s1634_s4, %s1481_s24  ;;  %p1485_p0 = scmp.lt.u32.totalorder %s1481_s24, %s1634_s4 }
 0x714   :  { %p1487_p1 = pnand %p1485_p0, %p1482_p13 }
 0x716   :  { %1490 = shalt.err (!%p1487_p1)
}
 0x717   :  { %1138 = dma.vmem_to_hbm [thread:$0]  %s1136_s3, 128, %s1634_s4, [#allocation4]  }
 0x718   :  { %1493 = dma.done.wait [#allocation4], 128  }
 0x719   :  { %1494 = vsyncadd [#allocation4], 4294967168 }
 0x71a   :  { %1142 = vsyncpa [#allocation3], 1 }
 0x71b   :  { %1143 = vsyncpa [#allocation4], 1 }

</bundles_post_ra>
